<compile_context>
chip_gen: v7x
topology: tpu7x:2x2x1
jax: 0.10.0
libtpu: 0.0.40
codegen_flags: <defaults>
</compile_context>

<pallas_src>
import jax
import jax.numpy as jnp
from jax import lax
from jax.experimental import pallas as pl
from jax.experimental.pallas import tpu as pltpu


def lstm_classifier_kernel(x_ref, w_ref, misc_ref, out_ref):
    T, D = x_ref.shape
    H4 = w_ref.shape[1]
    H = H4 // 4

    # Unpack the two parameter slabs with static sublane/lane slices (zero-cost views).
    w_ih = w_ref[0:D, :]              # (D, 4H)  bf16, i/f/o columns pre-scaled by 0.5
    w_hh = w_ref[D:D + H, :]          # (H, 4H)  bf16, i/f/o columns pre-scaled by 0.5
    bias = misc_ref[0:1, :]           # (1, 4H)  f32, fused b_ih+b_hh, same scaling
    w_fc = misc_ref[1:2, 0:H]         # (1, H)   f32
    b_fc = misc_ref[1:2, H:H + 1]     # (1, 1)   f32

    # Hoisted input projection: one bf16 (T,D)@(D,4H) MXU pass with real sublane
    # occupancy, f32 accumulation, fused bias.  Gate order along lanes: (i, f, g, o).
    gates_x = (jnp.dot(x_ref[...], w_ih, preferred_element_type=jnp.float32)
               + bias)                # (T, 4H) f32

    def cell(gates, c):
        # gates = [z_i/2, z_f/2, z_g, z_o/2]; sigmoid(z) = 0.5*tanh(z/2) + 0.5, so a
        # single tanh over all 4H lanes feeds every gate; the affine fixup is cheap VPU.
        t = jnp.tanh(gates)
        i = 0.5 * t[:, 0:H] + 0.5
        f = 0.5 * t[:, H:2 * H] + 0.5
        g = t[:, 2 * H:3 * H]
        o = 0.5 * t[:, 3 * H:4 * H] + 0.5
        c_new = f * c + i * g
        h_new = o * jnp.tanh(c_new)
        return h_new, c_new

    # t = 0: h0 == 0 -> recurrent matvec contributes nothing; skip the MXU pass + add.
    h, c = cell(gates_x[0:1, :], jnp.zeros((1, H), jnp.float32))

    # T is small and static: full trace-time unroll.  Only the (1,H)@(H,4H) matvec stays
    # on the serial per-step chain; W_hh stays resident in VMEM across all steps.
    for t in range(1, T):
        gates = gates_x[t:t + 1, :] + jnp.dot(
            h.astype(jnp.bfloat16), w_hh, preferred_element_type=jnp.float32)
        h, c = cell(gates, c)

    # Final FC: VPU multiply + lane reduction (avoids an MXU pass with one useful lane).
    logit = jnp.sum(h * w_fc, axis=-1, keepdims=True) + b_fc    # (1, 1)
    out_ref[...] = jax.nn.sigmoid(logit)


def prepare_params(w_ih, w_hh, b_ih, b_hh, w_fc, b_fc):
    """One-time parameter preparation (model-init time, NOT per forward call).

    PyTorch layouts in: w_ih (4H, D), w_hh (4H, H), b_ih/b_hh (4H,), w_fc (1, H),
    b_fc (1,).  Gate order along the 4H axis: (i, f, g, o).

    Packs everything into two lane-aligned arrays:
      w_slab (D+H, 4H) bf16 : rows [0,D) = W_ih^T, rows [D,D+H) = W_hh^T,
                              i/f/o columns pre-scaled by 0.5 (sigmoid-via-tanh identity)
      misc   (2,   4H) f32  : row 0 = scaled fused bias, row 1 = [w_fc | b_fc | 0...]
    """
    H = w_hh.shape[1]
    # 0.5 on i/f/o columns, 1.0 on g columns (sigmoid(z) = 0.5*tanh(z/2)+0.5).
    col_scale = jnp.concatenate([
        jnp.full((2 * H,), 0.5, jnp.float32),   # i, f
        jnp.ones((H,), jnp.float32),            # g
        jnp.full((H,), 0.5, jnp.float32),       # o
    ])

    w_ih_t = jnp.transpose(w_ih).astype(jnp.float32) * col_scale[None, :]   # (D, 4H)
    w_hh_t = jnp.transpose(w_hh).astype(jnp.float32) * col_scale[None, :]   # (H, 4H)
    bias = (b_ih + b_hh).astype(jnp.float32) * col_scale                    # (4H,)

    w_slab = jnp.concatenate([w_ih_t, w_hh_t], axis=0).astype(jnp.bfloat16)  # (D+H, 4H)

    misc = jnp.zeros((2, 4 * H), jnp.float32)
    misc = misc.at[0, :].set(bias)
    misc = misc.at[1, 0:H].set(w_fc.astype(jnp.float32).reshape(-1))
    misc = misc.at[1, H].set(b_fc.astype(jnp.float32)[0])

    return dict(w_slab=w_slab, misc=misc)


@jax.jit
def lstm_classifier_forward(x, params):
    """x: (seq_len, input_dim) float32.  Returns (1, 1) sigmoid output."""
    T, D = x.shape
    H4 = params["w_slab"].shape[1]
    H = H4 // 4

    cost = pl.CostEstimate(
        flops=2 * T * D * H4 + 2 * (T - 1) * H * H4 + 12 * T * H4,
        transcendentals=T * (H4 + H) + 1,
        bytes_accessed=(x.size * 2 + params["w_slab"].size * 2
                        + params["misc"].size * 4 + 4),
    )

    vmem = pl.BlockSpec(memory_space=pltpu.MemorySpace.VMEM)
    return pl.pallas_call(
        lstm_classifier_kernel,
        out_shape=jax.ShapeDtypeStruct((1, 1), jnp.float32),
        in_specs=[vmem, vmem, vmem],
        out_specs=vmem,
        cost_estimate=cost,
    )(x.astype(jnp.bfloat16), params["w_slab"], params["misc"])


def reference_forward(x, w_ih, w_hh, b_ih, b_hh, w_fc, b_fc):
    """Pure-JAX f32 reference replicating torch.nn.LSTM (batch_first, batch=1) + Linear + sigmoid."""
    H = w_hh.shape[1]
    h = jnp.zeros((H,), jnp.float32)
    c = jnp.zeros((H,), jnp.float32)

    def step(carry, x_t):
        h, c = carry
        gates = w_ih @ x_t + b_ih + w_hh @ h + b_hh
        i = jax.nn.sigmoid(gates[0:H])
        f = jax.nn.sigmoid(gates[H:2 * H])
        g = jnp.tanh(gates[2 * H:3 * H])
        o = jax.nn.sigmoid(gates[3 * H:4 * H])
        c_new = f * c + i * g
        h_new = o * jnp.tanh(c_new)
        return (h_new, c_new), None

    (h, c), _ = lax.scan(step, (h, c), x)
    out = jax.nn.sigmoid(w_fc @ h + b_fc)
    return out.reshape(1, 1)


if __name__ == "__main__":
    input_dim = 16
    hidden_dim = 32
    seq_len = 8

    key = jax.random.PRNGKey(0)
    ks = jax.random.split(key, 7)
    scale = 1.0 / jnp.sqrt(hidden_dim)

    x = jax.random.normal(ks[0], (seq_len, input_dim), jnp.float32)
    w_ih = jax.random.uniform(ks[1], (4 * hidden_dim, input_dim), jnp.float32, -scale, scale)
    w_hh = jax.random.uniform(ks[2], (4 * hidden_dim, hidden_dim), jnp.float32, -scale, scale)
    b_ih = jax.random.uniform(ks[3], (4 * hidden_dim,), jnp.float32, -scale, scale)
    b_hh = jax.random.uniform(ks[4], (4 * hidden_dim,), jnp.float32, -scale, scale)
    w_fc = jax.random.uniform(ks[5], (1, hidden_dim), jnp.float32, -scale, scale)
    b_fc = jax.random.uniform(ks[6], (1,), jnp.float32, -scale, scale)

    params = prepare_params(w_ih, w_hh, b_ih, b_hh, w_fc, b_fc)
    params = jax.tree_util.tree_map(jax.block_until_ready, params)  # one-time layout prep

    out = lstm_classifier_forward(x, params)
    out = jax.block_until_ready(out)

    ref = reference_forward(x, w_ih, w_hh, b_ih, b_hh, w_fc, b_fc)
    assert out.shape == (1, 1)
    # bf16 matmul operands introduce ~1e-3-level drift vs. the f32 reference (expected).
    assert jnp.allclose(out, ref, atol=1e-2, rtol=0.0), (out, ref)

    print("KERNEL_OK")
</pallas_src>

<mosaic_0001>
module attributes {stable_mosaic.version = 11 : i64} {
  func.func @lstm_classifier_kernel(%arg0: memref<8x16xbf16, #tpu.memory_space<vmem>>, %arg1: memref<48x128xbf16, #tpu.memory_space<vmem>>, %arg2: memref<2x128xf32, #tpu.memory_space<vmem>>, %arg3: memref<1x1xf32, #tpu.memory_space<vmem>>) attributes {dimension_semantics = [], scalar_prefetch = 0 : i64, scratch_operands = 0 : i64, tpu.core_type = #tpu.core_type<tc>} {
    %c0 = arith.constant 0 : index
    %c0_0 = arith.constant 0 : index
    %0 = vector.load %arg1[%c0, %c0_0] : memref<48x128xbf16, #tpu.memory_space<vmem>>, vector<16x128xbf16>
    %c16 = arith.constant 16 : index
    %c0_1 = arith.constant 0 : index
    %1 = vector.load %arg1[%c16, %c0_1] : memref<48x128xbf16, #tpu.memory_space<vmem>>, vector<32x128xbf16>
    %c0_2 = arith.constant 0 : index
    %c0_3 = arith.constant 0 : index
    %2 = vector.load %arg2[%c0_2, %c0_3] : memref<2x128xf32, #tpu.memory_space<vmem>>, vector<1x128xf32>
    %c1 = arith.constant 1 : index
    %c0_4 = arith.constant 0 : index
    %3 = vector.load %arg2[%c1, %c0_4] : memref<2x128xf32, #tpu.memory_space<vmem>>, vector<1x32xf32>
    %c1_5 = arith.constant 1 : index
    %c32 = arith.constant 32 : index
    %4 = vector.load %arg2[%c1_5, %c32] : memref<2x128xf32, #tpu.memory_space<vmem>>, vector<1x1xf32>
    %c0_6 = arith.constant 0 : index
    %c0_7 = arith.constant 0 : index
    %5 = vector.load %arg0[%c0_6, %c0_7] : memref<8x16xbf16, #tpu.memory_space<vmem>>, vector<8x16xbf16>
    %cst = arith.constant dense<0.000000e+00> : vector<8x128xf32>
    %6 = tpu.matmul %5, %0, %cst {dimension_numbers = #tpu.dot_dimension_numbers<[1], [0], [0], [1], [0, 0, 1, 1], [], []>} : vector<8x16xbf16>, vector<16x128xbf16>, vector<8x128xf32> -> vector<8x128xf32>
    %7 = vector.broadcast %2 : vector<1x128xf32> to vector<8x128xf32>
    %8 = arith.addf %6, %7 : vector<8x128xf32>
    %9 = vector.extract_strided_slice %8 {offsets = [0, 0], sizes = [1, 128], strides = [1, 1]} : vector<8x128xf32> to vector<1x128xf32>
    %cst_8 = arith.constant 0.000000e+00 : f32
    %10 = vector.broadcast %cst_8 : f32 to vector<1x32xf32>
    %11 = math.tanh %9 : vector<1x128xf32>
    %12 = vector.extract_strided_slice %11 {offsets = [0, 0], sizes = [1, 32], strides = [1, 1]} : vector<1x128xf32> to vector<1x32xf32>
    %cst_9 = arith.constant 5.000000e-01 : f32
    %13 = vector.broadcast %cst_9 : f32 to vector<1x32xf32>
    %14 = arith.mulf %13, %12 : vector<1x32xf32>
    %cst_10 = arith.constant 5.000000e-01 : f32
    %15 = vector.broadcast %cst_10 : f32 to vector<1x32xf32>
    %16 = arith.addf %14, %15 : vector<1x32xf32>
    %17 = vector.extract_strided_slice %11 {offsets = [0, 32], sizes = [1, 32], strides = [1, 1]} : vector<1x128xf32> to vector<1x32xf32>
    %cst_11 = arith.constant 5.000000e-01 : f32
    %18 = vector.broadcast %cst_11 : f32 to vector<1x32xf32>
    %19 = arith.mulf %18, %17 : vector<1x32xf32>
    %cst_12 = arith.constant 5.000000e-01 : f32
    %20 = vector.broadcast %cst_12 : f32 to vector<1x32xf32>
    %21 = arith.addf %19, %20 : vector<1x32xf32>
    %22 = vector.extract_strided_slice %11 {offsets = [0, 64], sizes = [1, 32], strides = [1, 1]} : vector<1x128xf32> to vector<1x32xf32>
    %23 = vector.extract_strided_slice %11 {offsets = [0, 96], sizes = [1, 32], strides = [1, 1]} : vector<1x128xf32> to vector<1x32xf32>
    %cst_13 = arith.constant 5.000000e-01 : f32
    %24 = vector.broadcast %cst_13 : f32 to vector<1x32xf32>
    %25 = arith.mulf %24, %23 : vector<1x32xf32>
    %cst_14 = arith.constant 5.000000e-01 : f32
    %26 = vector.broadcast %cst_14 : f32 to vector<1x32xf32>
    %27 = arith.addf %25, %26 : vector<1x32xf32>
    %28 = arith.mulf %21, %10 : vector<1x32xf32>
    %29 = arith.mulf %16, %22 : vector<1x32xf32>
    %30 = arith.addf %28, %29 : vector<1x32xf32>
    %31 = math.tanh %30 : vector<1x32xf32>
    %32 = arith.mulf %27, %31 : vector<1x32xf32>
    %33 = vector.extract_strided_slice %8 {offsets = [1, 0], sizes = [1, 128], strides = [1, 1]} : vector<8x128xf32> to vector<1x128xf32>
    %34 = arith.truncf %32 : vector<1x32xf32> to vector<1x32xbf16>
    %cst_15 = arith.constant dense<0.000000e+00> : vector<1x128xf32>
    %35 = tpu.matmul %34, %1, %cst_15 {dimension_numbers = #tpu.dot_dimension_numbers<[1], [0], [0], [1], [0, 0, 1, 1], [], []>} : vector<1x32xbf16>, vector<32x128xbf16>, vector<1x128xf32> -> vector<1x128xf32>
    %36 = arith.addf %33, %35 : vector<1x128xf32>
    %37 = math.tanh %36 : vector<1x128xf32>
    %38 = vector.extract_strided_slice %37 {offsets = [0, 0], sizes = [1, 32], strides = [1, 1]} : vector<1x128xf32> to vector<1x32xf32>
    %cst_16 = arith.constant 5.000000e-01 : f32
    %39 = vector.broadcast %cst_16 : f32 to vector<1x32xf32>
    %40 = arith.mulf %39, %38 : vector<1x32xf32>
    %cst_17 = arith.constant 5.000000e-01 : f32
    %41 = vector.broadcast %cst_17 : f32 to vector<1x32xf32>
    %42 = arith.addf %40, %41 : vector<1x32xf32>
    %43 = vector.extract_strided_slice %37 {offsets = [0, 32], sizes = [1, 32], strides = [1, 1]} : vector<1x128xf32> to vector<1x32xf32>
    %cst_18 = arith.constant 5.000000e-01 : f32
    %44 = vector.broadcast %cst_18 : f32 to vector<1x32xf32>
    %45 = arith.mulf %44, %43 : vector<1x32xf32>
    %cst_19 = arith.constant 5.000000e-01 : f32
    %46 = vector.broadcast %cst_19 : f32 to vector<1x32xf32>
    %47 = arith.addf %45, %46 : vector<1x32xf32>
    %48 = vector.extract_strided_slice %37 {offsets = [0, 64], sizes = [1, 32], strides = [1, 1]} : vector<1x128xf32> to vector<1x32xf32>
    %49 = vector.extract_strided_slice %37 {offsets = [0, 96], sizes = [1, 32], strides = [1, 1]} : vector<1x128xf32> to vector<1x32xf32>
    %cst_20 = arith.constant 5.000000e-01 : f32
    %50 = vector.broadcast %cst_20 : f32 to vector<1x32xf32>
    %51 = arith.mulf %50, %49 : vector<1x32xf32>
    %cst_21 = arith.constant 5.000000e-01 : f32
    %52 = vector.broadcast %cst_21 : f32 to vector<1x32xf32>
    %53 = arith.addf %51, %52 : vector<1x32xf32>
    %54 = arith.mulf %47, %30 : vector<1x32xf32>
    %55 = arith.mulf %42, %48 : vector<1x32xf32>
    %56 = arith.addf %54, %55 : vector<1x32xf32>
    %57 = math.tanh %56 : vector<1x32xf32>
    %58 = arith.mulf %53, %57 : vector<1x32xf32>
    %59 = vector.extract_strided_slice %8 {offsets = [2, 0], sizes = [1, 128], strides = [1, 1]} : vector<8x128xf32> to vector<1x128xf32>
    %60 = arith.truncf %58 : vector<1x32xf32> to vector<1x32xbf16>
    %cst_22 = arith.constant dense<0.000000e+00> : vector<1x128xf32>
    %61 = tpu.matmul %60, %1, %cst_22 {dimension_numbers = #tpu.dot_dimension_numbers<[1], [0], [0], [1], [0, 0, 1, 1], [], []>} : vector<1x32xbf16>, vector<32x128xbf16>, vector<1x128xf32> -> vector<1x128xf32>
    %62 = arith.addf %59, %61 : vector<1x128xf32>
    %63 = math.tanh %62 : vector<1x128xf32>
    %64 = vector.extract_strided_slice %63 {offsets = [0, 0], sizes = [1, 32], strides = [1, 1]} : vector<1x128xf32> to vector<1x32xf32>
    %cst_23 = arith.constant 5.000000e-01 : f32
    %65 = vector.broadcast %cst_23 : f32 to vector<1x32xf32>
    %66 = arith.mulf %65, %64 : vector<1x32xf32>
    %cst_24 = arith.constant 5.000000e-01 : f32
    %67 = vector.broadcast %cst_24 : f32 to vector<1x32xf32>
    %68 = arith.addf %66, %67 : vector<1x32xf32>
    %69 = vector.extract_strided_slice %63 {offsets = [0, 32], sizes = [1, 32], strides = [1, 1]} : vector<1x128xf32> to vector<1x32xf32>
    %cst_25 = arith.constant 5.000000e-01 : f32
    %70 = vector.broadcast %cst_25 : f32 to vector<1x32xf32>
    %71 = arith.mulf %70, %69 : vector<1x32xf32>
    %cst_26 = arith.constant 5.000000e-01 : f32
    %72 = vector.broadcast %cst_26 : f32 to vector<1x32xf32>
    %73 = arith.addf %71, %72 : vector<1x32xf32>
    %74 = vector.extract_strided_slice %63 {offsets = [0, 64], sizes = [1, 32], strides = [1, 1]} : vector<1x128xf32> to vector<1x32xf32>
    %75 = vector.extract_strided_slice %63 {offsets = [0, 96], sizes = [1, 32], strides = [1, 1]} : vector<1x128xf32> to vector<1x32xf32>
    %cst_27 = arith.constant 5.000000e-01 : f32
    %76 = vector.broadcast %cst_27 : f32 to vector<1x32xf32>
    %77 = arith.mulf %76, %75 : vector<1x32xf32>
    %cst_28 = arith.constant 5.000000e-01 : f32
    %78 = vector.broadcast %cst_28 : f32 to vector<1x32xf32>
    %79 = arith.addf %77, %78 : vector<1x32xf32>
    %80 = arith.mulf %73, %56 : vector<1x32xf32>
    %81 = arith.mulf %68, %74 : vector<1x32xf32>
    %82 = arith.addf %80, %81 : vector<1x32xf32>
    %83 = math.tanh %82 : vector<1x32xf32>
    %84 = arith.mulf %79, %83 : vector<1x32xf32>
    %85 = vector.extract_strided_slice %8 {offsets = [3, 0], sizes = [1, 128], strides = [1, 1]} : vector<8x128xf32> to vector<1x128xf32>
    %86 = arith.truncf %84 : vector<1x32xf32> to vector<1x32xbf16>
    %cst_29 = arith.constant dense<0.000000e+00> : vector<1x128xf32>
    %87 = tpu.matmul %86, %1, %cst_29 {dimension_numbers = #tpu.dot_dimension_numbers<[1], [0], [0], [1], [0, 0, 1, 1], [], []>} : vector<1x32xbf16>, vector<32x128xbf16>, vector<1x128xf32> -> vector<1x128xf32>
    %88 = arith.addf %85, %87 : vector<1x128xf32>
    %89 = math.tanh %88 : vector<1x128xf32>
    %90 = vector.extract_strided_slice %89 {offsets = [0, 0], sizes = [1, 32], strides = [1, 1]} : vector<1x128xf32> to vector<1x32xf32>
    %cst_30 = arith.constant 5.000000e-01 : f32
    %91 = vector.broadcast %cst_30 : f32 to vector<1x32xf32>
    %92 = arith.mulf %91, %90 : vector<1x32xf32>
    %cst_31 = arith.constant 5.000000e-01 : f32
    %93 = vector.broadcast %cst_31 : f32 to vector<1x32xf32>
    %94 = arith.addf %92, %93 : vector<1x32xf32>
    %95 = vector.extract_strided_slice %89 {offsets = [0, 32], sizes = [1, 32], strides = [1, 1]} : vector<1x128xf32> to vector<1x32xf32>
    %cst_32 = arith.constant 5.000000e-01 : f32
    %96 = vector.broadcast %cst_32 : f32 to vector<1x32xf32>
    %97 = arith.mulf %96, %95 : vector<1x32xf32>
    %cst_33 = arith.constant 5.000000e-01 : f32
    %98 = vector.broadcast %cst_33 : f32 to vector<1x32xf32>
    %99 = arith.addf %97, %98 : vector<1x32xf32>
    %100 = vector.extract_strided_slice %89 {offsets = [0, 64], sizes = [1, 32], strides = [1, 1]} : vector<1x128xf32> to vector<1x32xf32>
    %101 = vector.extract_strided_slice %89 {offsets = [0, 96], sizes = [1, 32], strides = [1, 1]} : vector<1x128xf32> to vector<1x32xf32>
    %cst_34 = arith.constant 5.000000e-01 : f32
    %102 = vector.broadcast %cst_34 : f32 to vector<1x32xf32>
    %103 = arith.mulf %102, %101 : vector<1x32xf32>
    %cst_35 = arith.constant 5.000000e-01 : f32
    %104 = vector.broadcast %cst_35 : f32 to vector<1x32xf32>
    %105 = arith.addf %103, %104 : vector<1x32xf32>
    %106 = arith.mulf %99, %82 : vector<1x32xf32>
    %107 = arith.mulf %94, %100 : vector<1x32xf32>
    %108 = arith.addf %106, %107 : vector<1x32xf32>
    %109 = math.tanh %108 : vector<1x32xf32>
    %110 = arith.mulf %105, %109 : vector<1x32xf32>
    %111 = vector.extract_strided_slice %8 {offsets = [4, 0], sizes = [1, 128], strides = [1, 1]} : vector<8x128xf32> to vector<1x128xf32>
    %112 = arith.truncf %110 : vector<1x32xf32> to vector<1x32xbf16>
    %cst_36 = arith.constant dense<0.000000e+00> : vector<1x128xf32>
    %113 = tpu.matmul %112, %1, %cst_36 {dimension_numbers = #tpu.dot_dimension_numbers<[1], [0], [0], [1], [0, 0, 1, 1], [], []>} : vector<1x32xbf16>, vector<32x128xbf16>, vector<1x128xf32> -> vector<1x128xf32>
    %114 = arith.addf %111, %113 : vector<1x128xf32>
    %115 = math.tanh %114 : vector<1x128xf32>
    %116 = vector.extract_strided_slice %115 {offsets = [0, 0], sizes = [1, 32], strides = [1, 1]} : vector<1x128xf32> to vector<1x32xf32>
    %cst_37 = arith.constant 5.000000e-01 : f32
    %117 = vector.broadcast %cst_37 : f32 to vector<1x32xf32>
    %118 = arith.mulf %117, %116 : vector<1x32xf32>
    %cst_38 = arith.constant 5.000000e-01 : f32
    %119 = vector.broadcast %cst_38 : f32 to vector<1x32xf32>
    %120 = arith.addf %118, %119 : vector<1x32xf32>
    %121 = vector.extract_strided_slice %115 {offsets = [0, 32], sizes = [1, 32], strides = [1, 1]} : vector<1x128xf32> to vector<1x32xf32>
    %cst_39 = arith.constant 5.000000e-01 : f32
    %122 = vector.broadcast %cst_39 : f32 to vector<1x32xf32>
    %123 = arith.mulf %122, %121 : vector<1x32xf32>
    %cst_40 = arith.constant 5.000000e-01 : f32
    %124 = vector.broadcast %cst_40 : f32 to vector<1x32xf32>
    %125 = arith.addf %123, %124 : vector<1x32xf32>
    %126 = vector.extract_strided_slice %115 {offsets = [0, 64], sizes = [1, 32], strides = [1, 1]} : vector<1x128xf32> to vector<1x32xf32>
    %127 = vector.extract_strided_slice %115 {offsets = [0, 96], sizes = [1, 32], strides = [1, 1]} : vector<1x128xf32> to vector<1x32xf32>
    %cst_41 = arith.constant 5.000000e-01 : f32
    %128 = vector.broadcast %cst_41 : f32 to vector<1x32xf32>
    %129 = arith.mulf %128, %127 : vector<1x32xf32>
    %cst_42 = arith.constant 5.000000e-01 : f32
    %130 = vector.broadcast %cst_42 : f32 to vector<1x32xf32>
    %131 = arith.addf %129, %130 : vector<1x32xf32>
    %132 = arith.mulf %125, %108 : vector<1x32xf32>
    %133 = arith.mulf %120, %126 : vector<1x32xf32>
    %134 = arith.addf %132, %133 : vector<1x32xf32>
    %135 = math.tanh %134 : vector<1x32xf32>
    %136 = arith.mulf %131, %135 : vector<1x32xf32>
    %137 = vector.extract_strided_slice %8 {offsets = [5, 0], sizes = [1, 128], strides = [1, 1]} : vector<8x128xf32> to vector<1x128xf32>
    %138 = arith.truncf %136 : vector<1x32xf32> to vector<1x32xbf16>
    %cst_43 = arith.constant dense<0.000000e+00> : vector<1x128xf32>
    %139 = tpu.matmul %138, %1, %cst_43 {dimension_numbers = #tpu.dot_dimension_numbers<[1], [0], [0], [1], [0, 0, 1, 1], [], []>} : vector<1x32xbf16>, vector<32x128xbf16>, vector<1x128xf32> -> vector<1x128xf32>
    %140 = arith.addf %137, %139 : vector<1x128xf32>
    %141 = math.tanh %140 : vector<1x128xf32>
    %142 = vector.extract_strided_slice %141 {offsets = [0, 0], sizes = [1, 32], strides = [1, 1]} : vector<1x128xf32> to vector<1x32xf32>
    %cst_44 = arith.constant 5.000000e-01 : f32
    %143 = vector.broadcast %cst_44 : f32 to vector<1x32xf32>
    %144 = arith.mulf %143, %142 : vector<1x32xf32>
    %cst_45 = arith.constant 5.000000e-01 : f32
    %145 = vector.broadcast %cst_45 : f32 to vector<1x32xf32>
    %146 = arith.addf %144, %145 : vector<1x32xf32>
    %147 = vector.extract_strided_slice %141 {offsets = [0, 32], sizes = [1, 32], strides = [1, 1]} : vector<1x128xf32> to vector<1x32xf32>
    %cst_46 = arith.constant 5.000000e-01 : f32
    %148 = vector.broadcast %cst_46 : f32 to vector<1x32xf32>
    %149 = arith.mulf %148, %147 : vector<1x32xf32>
    %cst_47 = arith.constant 5.000000e-01 : f32
    %150 = vector.broadcast %cst_47 : f32 to vector<1x32xf32>
    %151 = arith.addf %149, %150 : vector<1x32xf32>
    %152 = vector.extract_strided_slice %141 {offsets = [0, 64], sizes = [1, 32], strides = [1, 1]} : vector<1x128xf32> to vector<1x32xf32>
    %153 = vector.extract_strided_slice %141 {offsets = [0, 96], sizes = [1, 32], strides = [1, 1]} : vector<1x128xf32> to vector<1x32xf32>
    %cst_48 = arith.constant 5.000000e-01 : f32
    %154 = vector.broadcast %cst_48 : f32 to vector<1x32xf32>
    %155 = arith.mulf %154, %153 : vector<1x32xf32>
    %cst_49 = arith.constant 5.000000e-01 : f32
    %156 = vector.broadcast %cst_49 : f32 to vector<1x32xf32>
    %157 = arith.addf %155, %156 : vector<1x32xf32>
    %158 = arith.mulf %151, %134 : vector<1x32xf32>
    %159 = arith.mulf %146, %152 : vector<1x32xf32>
    %160 = arith.addf %158, %159 : vector<1x32xf32>
    %161 = math.tanh %160 : vector<1x32xf32>
    %162 = arith.mulf %157, %161 : vector<1x32xf32>
    %163 = vector.extract_strided_slice %8 {offsets = [6, 0], sizes = [1, 128], strides = [1, 1]} : vector<8x128xf32> to vector<1x128xf32>
    %164 = arith.truncf %162 : vector<1x32xf32> to vector<1x32xbf16>
    %cst_50 = arith.constant dense<0.000000e+00> : vector<1x128xf32>
    %165 = tpu.matmul %164, %1, %cst_50 {dimension_numbers = #tpu.dot_dimension_numbers<[1], [0], [0], [1], [0, 0, 1, 1], [], []>} : vector<1x32xbf16>, vector<32x128xbf16>, vector<1x128xf32> -> vector<1x128xf32>
    %166 = arith.addf %163, %165 : vector<1x128xf32>
    %167 = math.tanh %166 : vector<1x128xf32>
    %168 = vector.extract_strided_slice %167 {offsets = [0, 0], sizes = [1, 32], strides = [1, 1]} : vector<1x128xf32> to vector<1x32xf32>
    %cst_51 = arith.constant 5.000000e-01 : f32
    %169 = vector.broadcast %cst_51 : f32 to vector<1x32xf32>
    %170 = arith.mulf %169, %168 : vector<1x32xf32>
    %cst_52 = arith.constant 5.000000e-01 : f32
    %171 = vector.broadcast %cst_52 : f32 to vector<1x32xf32>
    %172 = arith.addf %170, %171 : vector<1x32xf32>
    %173 = vector.extract_strided_slice %167 {offsets = [0, 32], sizes = [1, 32], strides = [1, 1]} : vector<1x128xf32> to vector<1x32xf32>
    %cst_53 = arith.constant 5.000000e-01 : f32
    %174 = vector.broadcast %cst_53 : f32 to vector<1x32xf32>
    %175 = arith.mulf %174, %173 : vector<1x32xf32>
    %cst_54 = arith.constant 5.000000e-01 : f32
    %176 = vector.broadcast %cst_54 : f32 to vector<1x32xf32>
    %177 = arith.addf %175, %176 : vector<1x32xf32>
    %178 = vector.extract_strided_slice %167 {offsets = [0, 64], sizes = [1, 32], strides = [1, 1]} : vector<1x128xf32> to vector<1x32xf32>
    %179 = vector.extract_strided_slice %167 {offsets = [0, 96], sizes = [1, 32], strides = [1, 1]} : vector<1x128xf32> to vector<1x32xf32>
    %cst_55 = arith.constant 5.000000e-01 : f32
    %180 = vector.broadcast %cst_55 : f32 to vector<1x32xf32>
    %181 = arith.mulf %180, %179 : vector<1x32xf32>
    %cst_56 = arith.constant 5.000000e-01 : f32
    %182 = vector.broadcast %cst_56 : f32 to vector<1x32xf32>
    %183 = arith.addf %181, %182 : vector<1x32xf32>
    %184 = arith.mulf %177, %160 : vector<1x32xf32>
    %185 = arith.mulf %172, %178 : vector<1x32xf32>
    %186 = arith.addf %184, %185 : vector<1x32xf32>
    %187 = math.tanh %186 : vector<1x32xf32>
    %188 = arith.mulf %183, %187 : vector<1x32xf32>
    %189 = vector.extract_strided_slice %8 {offsets = [7, 0], sizes = [1, 128], strides = [1, 1]} : vector<8x128xf32> to vector<1x128xf32>
    %190 = arith.truncf %188 : vector<1x32xf32> to vector<1x32xbf16>
    %cst_57 = arith.constant dense<0.000000e+00> : vector<1x128xf32>
    %191 = tpu.matmul %190, %1, %cst_57 {dimension_numbers = #tpu.dot_dimension_numbers<[1], [0], [0], [1], [0, 0, 1, 1], [], []>} : vector<1x32xbf16>, vector<32x128xbf16>, vector<1x128xf32> -> vector<1x128xf32>
    %192 = arith.addf %189, %191 : vector<1x128xf32>
    %193 = math.tanh %192 : vector<1x128xf32>
    %194 = vector.extract_strided_slice %193 {offsets = [0, 0], sizes = [1, 32], strides = [1, 1]} : vector<1x128xf32> to vector<1x32xf32>
    %cst_58 = arith.constant 5.000000e-01 : f32
    %195 = vector.broadcast %cst_58 : f32 to vector<1x32xf32>
    %196 = arith.mulf %195, %194 : vector<1x32xf32>
    %cst_59 = arith.constant 5.000000e-01 : f32
    %197 = vector.broadcast %cst_59 : f32 to vector<1x32xf32>
    %198 = arith.addf %196, %197 : vector<1x32xf32>
    %199 = vector.extract_strided_slice %193 {offsets = [0, 32], sizes = [1, 32], strides = [1, 1]} : vector<1x128xf32> to vector<1x32xf32>
    %cst_60 = arith.constant 5.000000e-01 : f32
    %200 = vector.broadcast %cst_60 : f32 to vector<1x32xf32>
    %201 = arith.mulf %200, %199 : vector<1x32xf32>
    %cst_61 = arith.constant 5.000000e-01 : f32
    %202 = vector.broadcast %cst_61 : f32 to vector<1x32xf32>
    %203 = arith.addf %201, %202 : vector<1x32xf32>
    %204 = vector.extract_strided_slice %193 {offsets = [0, 64], sizes = [1, 32], strides = [1, 1]} : vector<1x128xf32> to vector<1x32xf32>
    %205 = vector.extract_strided_slice %193 {offsets = [0, 96], sizes = [1, 32], strides = [1, 1]} : vector<1x128xf32> to vector<1x32xf32>
    %cst_62 = arith.constant 5.000000e-01 : f32
    %206 = vector.broadcast %cst_62 : f32 to vector<1x32xf32>
    %207 = arith.mulf %206, %205 : vector<1x32xf32>
    %cst_63 = arith.constant 5.000000e-01 : f32
    %208 = vector.broadcast %cst_63 : f32 to vector<1x32xf32>
    %209 = arith.addf %207, %208 : vector<1x32xf32>
    %210 = arith.mulf %203, %186 : vector<1x32xf32>
    %211 = arith.mulf %198, %204 : vector<1x32xf32>
    %212 = arith.addf %210, %211 : vector<1x32xf32>
    %213 = math.tanh %212 : vector<1x32xf32>
    %214 = arith.mulf %209, %213 : vector<1x32xf32>
    %215 = arith.mulf %214, %3 : vector<1x32xf32>
    %cst_64 = arith.constant dense<0.000000e+00> : vector<1xf32>
    %216 = vector.multi_reduction <add>, %215, %cst_64 [1] : vector<1x32xf32> to vector<1xf32>
    %217 = vector.shape_cast %216 : vector<1xf32> to vector<1x1xf32>
    %218 = arith.addf %217, %4 : vector<1x1xf32>
    %219 = arith.negf %218 : vector<1x1xf32>
    %220 = math.exp %219 : vector<1x1xf32>
    %cst_65 = arith.constant 1.000000e+00 : f32
    %221 = vector.broadcast %cst_65 : f32 to vector<1x1xf32>
    %222 = arith.addf %221, %220 : vector<1x1xf32>
    %223 = arith.divf %221, %222 : vector<1x1xf32>
    %c0_66 = arith.constant 0 : index
    %c0_67 = arith.constant 0 : index
    %224 = vector.load %arg3[%c0_66, %c0_67] : memref<1x1xf32, #tpu.memory_space<vmem>>, vector<1x1xf32>
    tpu.vector_store %arg3[%c0_66, %c0_67], %223 {strides = array<i32>} : memref<1x1xf32, #tpu.memory_space<vmem>>, vector<1x1xf32>,
    return
  }
}

</mosaic_0001>

<bundles_post_ra>
// kernel: lstm_classifier_forward.1
= control target key start
LH: loop header
LB: loop body
LE: loop exit
PB: predicated region body
PF: predicated region fallthrough
CT: control target
= control target key end

     0   :  { %8 = vsyncpa [#allocation3], 0  ;;  %s1047_s0 = inlined_call_operand.vmem [shape: bf16[8,16], index: 0, kind: input, shape index: {}]   ;;  %s1048_s1 = inlined_call_operand.hbm [shape: bf16[48,128], index: 1, kind: input, shape index: {}]   ;;  %s1049_s2 = inlined_call_operand.vmem [shape: f32[2,128], index: 2, kind: input, shape index: {}]   ;;  %s1050_s3 = inlined_call_operand.hbm [shape: f32[1,1], index: 3, kind: output, shape index: {}]  }
   0x1   :  { %9 = vsyncpa [#allocation4], 0  ;;  %s886_s12 = smov [#allocation2]   ;;  %s838_s16 = scalar_lea.hbm %s1048_s1, 384 }
   0x2   :  { %s17_s13 = sshll.u32 %s886_s12, 4  ;;  %p839_p0 = scmp.ne.s32.totalorder %s1048_s1, %s838_s16  ;;  %s18_s13 = int_to_ptr.vmem [resolvable:$true] %s17_s13 }
   0x3   :  { %p842_p1 = scmp.lt.u32.totalorder %s838_s16, %s1048_s1 }
   0x5   :  { %p844_p2 = pnand %p842_p1, %p839_p0 }
   0x7   :  { %847 = shalt.err (!%p844_p2)
}
   0x8   :  { %s848_s21 = scalar_lea.vmem %s18_s13, 384  ;;  %p853_p4 = scmp.lt.s32.totalorder %s18_s13, %s18_s13 }
   0x9   :  { %p849_p3 = scmp.ne.s32.totalorder %s18_s13, %s848_s21  ;;  %p854_p5 = scmp.lt.s32.totalorder %s848_s21, %s848_s21 }
   0xb   :  { %p855_p6 = por %p854_p5, %p853_p4 }
   0xd   :  { %p856_p7 = pnand %p855_p6, %p849_p3 }
   0xf   :  { %859 = shalt.err (!%p856_p7)
}
  0x10   :  { %s887_s22 = smov 64   ;;  %s888_s23 = smov 4  }
  0x11   :  { %23 = dma.hbm_to_vmem [thread:$0]  %s1048_s1, 384, %s18_s13, [#allocation3], %s887_s22, %s887_s22, %s888_s23  }
  0x12   :  { %882 = dma.done.wait [#allocation3], 384  }
  0x13   :  { %883 = vsyncadd [#allocation3], 4294966912  ;;  %v889_v0 = vmov 0.0   ;;  %vm890_vm0 = vmmov 0   ;;  %v799_v1 = vld [vmem:[#allocation2] sm:$0xff]   ;;  %vm49_vm1 = vcmask 130048  }
  0x14   :  { %729 = vmatprep.subr.bf16.mxu0 %v889_v0  ;;  %731 = vmatprep.mubr.msk.bf16.mxu0 %vm890_vm0, %v889_v0  ;;  %v38_v2 = vld [vmem:[%s1047_s0] sm:$0xf]  ;;  %s891_s0 = smov 32   ;;  %v948_v17 = vld [vmem:[#allocation2 + $0x8] sm:$0xff]   ;;  %v951_v18 = vld [vmem:[#allocation2 + $0x10] sm:$0xff]   ;;  %vm129_vm2 = vcmask 261120  }
  0x15   :  { %735 = vmatprep.subr.bf16.mxu1 %v889_v0  ;;  %739 = vmatprep.mubr.msk.bf16.mxu1 %vm890_vm0, %v889_v0  ;;  %v693_v3 = vld [vmem:[%s1049_s2] ss:$0 sm:$0xff]  ;;  %s892_s4 = smov 96   ;;  %vm665_vm3 = vcmask 261127   ;;  %vm676_vm4 = vcmask 7175  }
  0x16   :  { %730 = vmatpush3.bf16.msra.mxu0 %v799_v1  ;;  %736 = vmatpush3.bf16.msra.mxu1 %v948_v17 }
  0x17   :  { %743 = vmatprep.subr.bf16.mxu0 %v889_v0  ;;  %737 = vmatprep.subr.bf16.mxu1 %v889_v0 }
  0x19   :  { %732 = vmatmul.mubr.msk.bf16.vlgmr.msra.gmra.mrb[0].mxu0 %vm49_vm1, %v38_v2 }
  0x1a   :  { %747 = vmatprep.mubr.msk.bf16.mxu0 %vm890_vm0, %v889_v0  ;;  %744 = vmatpush3.bf16.msra.mxu0 %v948_v17 }
  0x1b   :  { %745 = vmatprep.subr.bf16.mxu0 %v889_v0  ;;  %738 = vmatpush3.bf16.msra.mxu1 %v951_v18 }
  0x1c   :  { %751 = vmatprep.subr.bf16.mxu1 %v889_v0 }
  0x1e   :  { %746 = vmatpush3.bf16.msra.mxu0 %v951_v18 }
  0x1f   :  { %759 = vmatprep.subr.bf16.mxu0 %v889_v0 }
  0xec   :  { %v87_v4 = vpop.f32.mrb[0].mxu0 }
  0xed   :  { %v943_v5 = vadd.f32 %v693_v3, %v87_v4  ;;  %v733_v6 = vpop.f32.mrb[1].mxu0 }
  0xee   :  { %v90_v7 = vpop.f32.mrb[2].mxu0 }
  0xef   :  { %v734_v8 = vpop.f32.mrb[3].mxu0  ;;  %802 = vtanh.f32 %v943_v5 }
  0xf9   :  { %v803_v9 = vpop.eup %802 }
  0xfa   :  { %98 = vrot.lane.b32.xlu0 %v803_v9, %s887_s22  ;;  %v94_v10 = vmul.f32 0.5, %v803_v9 }
  0xfc   :  { %v95_v11 = vadd.f32 0.5, %v94_v10 }
  0xfe   :  { %v96_v14 = vmul.f32 0.0, %v95_v11 }
 0x16c   :  { %v99_v12 = vpop.permute.xlu0 %98 }
 0x16d   :  { %v101_v13 = vmul.f32 %v99_v12, %v95_v11 }
 0x16f   :  { %103 = vrot.lane.b32.xlu0 %v101_v13, %s891_s0 }
 0x1e1   :  { %v104_v15 = vpop.permute.xlu0 %103 }
 0x1e2   :  { %v106_v16 = vadd.f32 %v104_v15, %v96_v14 }
 0x1e4   :  { %804 = vtanh.f32 %v106_v16  ;;  %v181_v35 = vrot.slane %v106_v16, 7 }
 0x1ee   :  { %v805_v19 = vpop.eup %804 }
 0x1ef   :  { %109 = vrot.lane.b32.xlu1 %v805_v19, %s887_s22 }
 0x261   :  { %v110_v20 = vpop.permute.xlu1 %109 }
 0x262   :  { %v112_v21 = vmul.f32 %v110_v20, %v95_v11 }
 0x264   :  { %v113_v22 = vpack.c.bf16 %v112_v21, %v112_v21 }
 0x266   :  { %115 = vrot.lane.b32.xlu1 %v113_v22, %s891_s0 }
 0x2d8   :  { %v116_v23 = vpop.permute.xlu1 %115 }
 0x2d9   :  { %740 = vmatmul.mubr.msk.bf16.vlgmr.msra.gmra.mrb[0].mxu1 %vm129_vm2, %v116_v23 }
 0x2da   :  { %752 = vmatpush3.bf16.msra.mxu1 %v948_v17  ;;  %755 = vmatprep.mubr.msk.bf16.mxu1 %vm890_vm0, %v889_v0 }
 0x2db   :  { %753 = vmatprep.subr.bf16.mxu1 %v889_v0 }
 0x2de   :  { %754 = vmatpush3.bf16.msra.mxu1 %v951_v18 }
 0x2df   :  { %767 = vmatprep.subr.bf16.mxu1 %v889_v0 }
 0x3ac   :  { %v167_v24 = vpop.f32.mrb[0].mxu1 }
 0x3ad   :  { %v174_v25 = vrot.slane %v167_v24, 7  ;;  %v741_v26 = vpop.f32.mrb[1].mxu1 }
 0x3ae   :  { %v170_v27 = vpop.f32.mrb[2].mxu1 }
 0x3af   :  { %v176_v28 = vadd.f32 %v174_v25, %v943_v5  ;;  %v742_v29 = vpop.f32.mrb[3].mxu1 }
 0x3b1   :  { %806 = vtanh.f32 %v176_v28 }
 0x3bb   :  { %v807_v30 = vpop.eup %806 }
 0x3bc   :  { %185 = vrot.lane.b32.xlu0 %v807_v30, %s887_s22  ;;  %v178_v31 = vmul.f32 0.5, %v807_v30 }
 0x3be   :  { %v179_v32 = vadd.f32 0.5, %v178_v31 }
 0x3c0   :  { %v183_v36 = vmul.f32 %v181_v35, %v179_v32 }
 0x42e   :  { %v186_v33 = vpop.permute.xlu0 %185 }
 0x42f   :  { %v188_v34 = vmul.f32 %v186_v33, %v179_v32 }
 0x431   :  { %190 = vrot.lane.b32.xlu1 %v188_v34, %s891_s0 }
 0x4a3   :  { %v191_v37 = vpop.permute.xlu1 %190 }
 0x4a4   :  { %v193_v38 = vadd.f32 %v191_v37, %v183_v36 }
 0x4a6   :  { %808 = vtanh.f32 %v193_v38  ;;  %v257_v56 = vrot.slane %v193_v38, 7 }
 0x4b0   :  { %v809_v39 = vpop.eup %808 }
 0x4b1   :  { %196 = vrot.lane.b32.xlu0 %v809_v39, %s887_s22 }
 0x523   :  { %v197_v40 = vpop.permute.xlu0 %196 }
 0x524   :  { %v199_v41 = vmul.f32 %v197_v40, %v179_v32 }
 0x526   :  { %v200_v42 = vpack.c.bf16 %v199_v41, %v199_v41 }
 0x528   :  { %v202_v43 = vshrl.u32 %v200_v42, 16 }
 0x52a   :  { %204 = vrot.lane.b32.xlu1 %v202_v43, %s891_s0 }
 0x59c   :  { %v205_v44 = vpop.permute.xlu1 %204 }
 0x59d   :  { %748 = vmatmul.mubr.msk.bf16.vlgmr.msra.gmra.mrb[4].mxu0 %vm129_vm2, %v205_v44 }
 0x59e   :  { %760 = vmatpush3.bf16.msra.mxu0 %v948_v17  ;;  %763 = vmatprep.mubr.msk.bf16.mxu0 %vm890_vm0, %v889_v0 }
 0x59f   :  { %761 = vmatprep.subr.bf16.mxu0 %v889_v0 }
 0x5a2   :  { %762 = vmatpush3.bf16.msra.mxu0 %v951_v18 }
 0x5a3   :  { %775 = vmatprep.subr.bf16.mxu0 %v889_v0 }
 0x670   :  { %v243_v45 = vpop.f32.mrb[4].mxu0 }
 0x671   :  { %v250_v46 = vrot.slane %v243_v45, 6  ;;  %v749_v47 = vpop.f32.mrb[5].mxu0 }
 0x672   :  { %v246_v48 = vpop.f32.mrb[6].mxu0 }
 0x673   :  { %v252_v49 = vadd.f32 %v250_v46, %v943_v5  ;;  %v750_v50 = vpop.f32.mrb[7].mxu0 }
 0x675   :  { %810 = vtanh.f32 %v252_v49 }
 0x67f   :  { %v811_v51 = vpop.eup %810 }
 0x680   :  { %261 = vrot.lane.b32.xlu0 %v811_v51, %s887_s22  ;;  %v254_v52 = vmul.f32 0.5, %v811_v51 }
 0x682   :  { %v255_v53 = vadd.f32 0.5, %v254_v52 }
 0x684   :  { %v259_v57 = vmul.f32 %v257_v56, %v255_v53 }
 0x6f2   :  { %v262_v54 = vpop.permute.xlu0 %261 }
 0x6f3   :  { %v264_v55 = vmul.f32 %v262_v54, %v255_v53 }
 0x6f5   :  { %266 = vrot.lane.b32.xlu1 %v264_v55, %s891_s0 }
 0x767   :  { %v267_v58 = vpop.permute.xlu1 %266 }
 0x768   :  { %v269_v59 = vadd.f32 %v267_v58, %v259_v57 }
 0x76a   :  { %812 = vtanh.f32 %v269_v59  ;;  %v332_v15 = vrot.slane %v269_v59, 7 }
 0x774   :  { %v813_v60 = vpop.eup %812 }
 0x775   :  { %272 = vrot.lane.b32.xlu0 %v813_v60, %s887_s22 }
 0x7e7   :  { %v273_v61 = vpop.permute.xlu0 %272 }
 0x7e8   :  { %v275_v62 = vmul.f32 %v273_v61, %v255_v53 }
 0x7ea   :  { %v276_v63 = vpack.c.bf16 %v275_v62, %v275_v62 }
 0x7ec   :  { %v278_v1 = vrot.slane %v276_v63, 1 }
 0x7ee   :  { %279 = vrot.lane.b32.xlu1 %v278_v1, %s891_s0 }
 0x860   :  { %v280_v2 = vpop.permute.xlu1 %279 }
 0x861   :  { %756 = vmatmul.mubr.msk.bf16.vlgmr.msra.gmra.mrb[4].mxu1 %vm129_vm2, %v280_v2 }
 0x862   :  { %768 = vmatpush3.bf16.msra.mxu1 %v948_v17  ;;  %771 = vmatprep.mubr.msk.bf16.mxu1 %vm890_vm0, %v889_v0 }
 0x863   :  { %769 = vmatprep.subr.bf16.mxu1 %v889_v0 }
 0x866   :  { %770 = vmatpush3.bf16.msra.mxu1 %v951_v18 }
 0x867   :  { %783 = vmatprep.subr.bf16.mxu1 %v889_v0 }
 0x934   :  { %v318_v3 = vpop.f32.mrb[4].mxu1 }
 0x935   :  { %v325_v4 = vrot.slane %v318_v3, 5  ;;  %v757_v6 = vpop.f32.mrb[5].mxu1 }
 0x936   :  { %v321_v7 = vpop.f32.mrb[6].mxu1 }
 0x937   :  { %v327_v8 = vadd.f32 %v325_v4, %v943_v5  ;;  %v758_v9 = vpop.f32.mrb[7].mxu1 }
 0x939   :  { %814 = vtanh.f32 %v327_v8 }
 0x943   :  { %v815_v10 = vpop.eup %814 }
 0x944   :  { %336 = vrot.lane.b32.xlu0 %v815_v10, %s887_s22  ;;  %v329_v11 = vmul.f32 0.5, %v815_v10 }
 0x946   :  { %v330_v12 = vadd.f32 0.5, %v329_v11 }
 0x948   :  { %v334_v16 = vmul.f32 %v332_v15, %v330_v12 }
 0x9b6   :  { %v337_v13 = vpop.permute.xlu0 %336 }
 0x9b7   :  { %v339_v14 = vmul.f32 %v337_v13, %v330_v12 }
 0x9b9   :  { %341 = vrot.lane.b32.xlu1 %v339_v14, %s891_s0 }
 0xa2b   :  { %v342_v19 = vpop.permute.xlu1 %341 }
 0xa2c   :  { %v344_v20 = vadd.f32 %v342_v19, %v334_v16 }
 0xa2e   :  { %816 = vtanh.f32 %v344_v20  ;;  %v409_v39 = vrot.slane %v344_v20, 7 }
 0xa38   :  { %v817_v21 = vpop.eup %816 }
 0xa39   :  { %347 = vrot.lane.b32.xlu0 %v817_v21, %s887_s22 }
 0xaab   :  { %v348_v22 = vpop.permute.xlu0 %347 }
 0xaac   :  { %v350_v23 = vmul.f32 %v348_v22, %v330_v12 }
 0xaae   :  { %v351_v24 = vpack.c.bf16 %v350_v23, %v350_v23 }
 0xab0   :  { %v353_v25 = vshrl.u32 %v351_v24, 16 }
 0xab2   :  { %v355_v26 = vrot.slane %v353_v25, 1 }
 0xab4   :  { %356 = vrot.lane.b32.xlu1 %v355_v26, %s891_s0 }
 0xb26   :  { %v357_v27 = vpop.permute.xlu1 %356 }
 0xb27   :  { %764 = vmatmul.mubr.msk.bf16.vlgmr.msra.gmra.mrb[8].mxu0 %vm129_vm2, %v357_v27 }
 0xb28   :  { %776 = vmatpush3.bf16.msra.mxu0 %v948_v17  ;;  %779 = vmatprep.mubr.msk.bf16.mxu0 %vm890_vm0, %v889_v0 }
 0xb29   :  { %777 = vmatprep.subr.bf16.mxu0 %v889_v0 }
 0xb2c   :  { %778 = vmatpush3.bf16.msra.mxu0 %v951_v18 }
 0xbfa   :  { %v395_v28 = vpop.f32.mrb[8].mxu0 }
 0xbfb   :  { %v402_v29 = vrot.slane %v395_v28, 4  ;;  %v765_v30 = vpop.f32.mrb[9].mxu0 }
 0xbfc   :  { %v398_v31 = vpop.f32.mrb[10].mxu0 }
 0xbfd   :  { %v404_v32 = vadd.f32 %v402_v29, %v943_v5  ;;  %v766_v33 = vpop.f32.mrb[11].mxu0 }
 0xbff   :  { %818 = vtanh.f32 %v404_v32 }
 0xc09   :  { %v819_v34 = vpop.eup %818 }
 0xc0a   :  { %413 = vrot.lane.b32.xlu0 %v819_v34, %s887_s22  ;;  %v406_v35 = vmul.f32 0.5, %v819_v34 }
 0xc0c   :  { %v407_v36 = vadd.f32 0.5, %v406_v35 }
 0xc0e   :  { %v411_v40 = vmul.f32 %v409_v39, %v407_v36 }
 0xc7c   :  { %v414_v37 = vpop.permute.xlu0 %413 }
 0xc7d   :  { %v416_v38 = vmul.f32 %v414_v37, %v407_v36 }
 0xc7f   :  { %418 = vrot.lane.b32.xlu1 %v416_v38, %s891_s0 }
 0xcf1   :  { %v419_v41 = vpop.permute.xlu1 %418 }
 0xcf2   :  { %v421_v42 = vadd.f32 %v419_v41, %v411_v40  ;;  %v37_v40 = vld [vmem:[%s1049_s2 + $0x1] sm:$0x1]  ;;  %s893_s2 = smov [#allocation5]  }
 0xcf3   :  { %v656_v41 = vrot.slane %v37_v40, 1  ;;  %s684_s5 = sshll.u32 %s893_s2, 4  ;;  %s685_s5 = int_to_ptr.vmem [resolvable:$true] %s684_s5 }
 0xcf4   :  { %820 = vtanh.f32 %v421_v42  ;;  %s860_s6 = scalar_lea.vmem %s685_s5, 16  ;;  %s864_s7 = scalar_lea.vmem %s685_s5, 32 }
 0xcf5   :  { %p861_p8 = scmp.ne.s32.totalorder %s685_s5, %s860_s6  ;;  %p865_p9 = scmp.lt.s32.totalorder %s685_s5, %s685_s5 }
 0xcf6   :  { %p866_p10 = scmp.lt.s32.totalorder %s864_s7, %s860_s6 }
 0xcf8   :  { %p867_p11 = por %p866_p10, %p865_p9 }
 0xcfa   :  { %p868_p12 = pnand %p867_p11, %p861_p8 }
 0xcfe   :  { %v821_v43 = vpop.eup %820 }
 0xcff   :  { %424 = vrot.lane.b32.xlu0 %v821_v43, %s887_s22 }
 0xd71   :  { %v425_v44 = vpop.permute.xlu0 %424 }
 0xd72   :  { %v427_v45 = vmul.f32 %v425_v44, %v407_v36 }
 0xd74   :  { %v428_v46 = vpack.c.bf16 %v427_v45, %v427_v45 }
 0xd76   :  { %v430_v47 = vrot.slane %v428_v46, 2 }
 0xd78   :  { %431 = vrot.lane.b32.xlu1 %v430_v47, %s891_s0 }
 0xdea   :  { %v432_v48 = vpop.permute.xlu1 %431 }
 0xdeb   :  { %772 = vmatmul.mubr.msk.bf16.vlgmr.msra.gmra.mrb[8].mxu1 %vm129_vm2, %v432_v48 }
 0xdec   :  { %784 = vmatpush3.bf16.msra.mxu1 %v948_v17  ;;  %787 = vmatprep.mubr.msk.bf16.mxu1 %vm890_vm0, %v889_v0 }
 0xded   :  { %785 = vmatprep.subr.bf16.mxu1 %v889_v0  ;;  %v484_v0 = vrot.slane %v421_v42, 7 }
 0xdf0   :  { %786 = vmatpush3.bf16.msra.mxu1 %v951_v18 }
 0xebe   :  { %v470_v49 = vpop.f32.mrb[8].mxu1 }
 0xebf   :  { %v477_v50 = vrot.slane %v470_v49, 3  ;;  %v773_v51 = vpop.f32.mrb[9].mxu1 }
 0xec0   :  { %v473_v52 = vpop.f32.mrb[10].mxu1 }
 0xec1   :  { %v479_v53 = vadd.f32 %v477_v50, %v943_v5  ;;  %v774_v54 = vpop.f32.mrb[11].mxu1 }
 0xec3   :  { %822 = vtanh.f32 %v479_v53 }
 0xecd   :  { %v823_v55 = vpop.eup %822 }
 0xece   :  { %488 = vrot.lane.b32.xlu0 %v823_v55, %s887_s22  ;;  %v481_v56 = vmul.f32 0.5, %v823_v55 }
 0xed0   :  { %v482_v17 = vadd.f32 0.5, %v481_v56 }
 0xed2   :  { %v486_v59 = vmul.f32 %v484_v0, %v482_v17 }
 0xf40   :  { %v489_v57 = vpop.permute.xlu0 %488 }
 0xf41   :  { %v491_v58 = vmul.f32 %v489_v57, %v482_v17 }
 0xf43   :  { %493 = vrot.lane.b32.xlu1 %v491_v58, %s891_s0 }
 0xfb5   :  { %v494_v18 = vpop.permute.xlu1 %493 }
 0xfb6   :  { %v496_v60 = vadd.f32 %v494_v18, %v486_v59 }
 0xfb8   :  { %824 = vtanh.f32 %v496_v60  ;;  %v561_v19 = vrot.slane %v496_v60, 7 }
 0xfc2   :  { %v825_v61 = vpop.eup %824 }
 0xfc3   :  { %499 = vrot.lane.b32.xlu0 %v825_v61, %s887_s22 }
0x1035   :  { %v500_v62 = vpop.permute.xlu0 %499 }
0x1036   :  { %v502_v63 = vmul.f32 %v500_v62, %v482_v17 }
0x1038   :  { %v503_v1 = vpack.c.bf16 %v502_v63, %v502_v63 }
0x103a   :  { %v505_v2 = vshrl.u32 %v503_v1, 16 }
0x103c   :  { %v507_v3 = vrot.slane %v505_v2, 2 }
0x103e   :  { %508 = vrot.lane.b32.xlu1 %v507_v3, %s891_s0 }
0x10b0   :  { %v509_v4 = vpop.permute.xlu1 %508 }
0x10b1   :  { %780 = vmatmul.mubr.msk.bf16.vlgmr.msra.gmra.mrb[12].mxu0 %vm129_vm2, %v509_v4 }
0x1184   :  { %v547_v6 = vpop.f32.mrb[12].mxu0 }
0x1185   :  { %v554_v7 = vrot.slane %v547_v6, 2  ;;  %v781_v8 = vpop.f32.mrb[13].mxu0 }
0x1186   :  { %v550_v9 = vpop.f32.mrb[14].mxu0 }
0x1187   :  { %v556_v10 = vadd.f32 %v554_v7, %v943_v5  ;;  %v782_v11 = vpop.f32.mrb[15].mxu0 }
0x1189   :  { %826 = vtanh.f32 %v556_v10 }
0x1193   :  { %v827_v12 = vpop.eup %826 }
0x1194   :  { %565 = vrot.lane.b32.xlu0 %v827_v12, %s887_s22  ;;  %v558_v13 = vmul.f32 0.5, %v827_v12 }
0x1196   :  { %v559_v14 = vadd.f32 0.5, %v558_v13 }
0x1198   :  { %v563_v20 = vmul.f32 %v561_v19, %v559_v14 }
0x1206   :  { %v566_v15 = vpop.permute.xlu0 %565 }
0x1207   :  { %v568_v16 = vmul.f32 %v566_v15, %v559_v14 }
0x1209   :  { %570 = vrot.lane.b32.xlu1 %v568_v16, %s891_s0 }
0x127b   :  { %v571_v21 = vpop.permute.xlu1 %570 }
0x127c   :  { %v573_v22 = vadd.f32 %v571_v21, %v563_v20 }
0x127e   :  { %828 = vtanh.f32 %v573_v22  ;;  %v636_v42 = vrot.slane %v573_v22, 7 }
0x1288   :  { %v829_v23 = vpop.eup %828 }
0x1289   :  { %576 = vrot.lane.b32.xlu0 %v829_v23, %s887_s22 }
0x12fb   :  { %v577_v24 = vpop.permute.xlu0 %576 }
0x12fc   :  { %v579_v25 = vmul.f32 %v577_v24, %v559_v14 }
0x12fe   :  { %v580_v26 = vpack.c.bf16 %v579_v25, %v579_v25 }
0x1300   :  { %v582_v27 = vrot.slane %v580_v26, 3 }
0x1302   :  { %583 = vrot.lane.b32.xlu1 %v582_v27, %s891_s0 }
0x1374   :  { %v584_v28 = vpop.permute.xlu1 %583 }
0x1375   :  { %788 = vmatmul.mubr.msk.bf16.vlgmr.msra.gmra.mrb[12].mxu1 %vm129_vm2, %v584_v28 }
0x1448   :  { %v622_v29 = vpop.f32.mrb[12].mxu1 }
0x1449   :  { %v629_v30 = vrot.slane %v622_v29, 1  ;;  %v789_v31 = vpop.f32.mrb[13].mxu1 }
0x144a   :  { %v625_v32 = vpop.f32.mrb[14].mxu1 }
0x144b   :  { %v631_v33 = vadd.f32 %v629_v30, %v943_v5  ;;  %v790_v34 = vpop.f32.mrb[15].mxu1 }
0x144d   :  { %830 = vtanh.f32 %v631_v33 }
0x1457   :  { %v831_v35 = vpop.eup %830 }
0x1458   :  { %640 = vrot.lane.b32.xlu0 %v831_v35, %s887_s22  ;;  %v633_v36 = vmul.f32 0.5, %v831_v35 }
0x145a   :  { %v634_v37 = vadd.f32 0.5, %v633_v36 }
0x145c   :  { %v638_v5 = vmul.f32 %v636_v42, %v634_v37 }
0x14ca   :  { %v641_v38 = vpop.permute.xlu0 %640 }
0x14cb   :  { %v643_v39 = vmul.f32 %v641_v38, %v634_v37 }
0x14cd   :  { %645 = vrot.lane.b32.xlu1 %v643_v39, %s891_s0 }
0x14d1   :  { %657 = vrot.lane.b32.xlu1 %v656_v41, %s892_s4 }
0x153f   :  { %v646_v43 = vpop.permute.xlu1 %645 }
0x1540   :  { %v648_v44 = vadd.f32 %v646_v43, %v638_v5 }
0x1542   :  { %832 = vtanh.f32 %v648_v44 }
0x1543   :  { %v658_v47 = vpop.permute.xlu1 %657 }
0x154c   :  { %v833_v45 = vpop.eup %832 }
0x154d   :  { %651 = vrot.lane.b32.xlu0 %v833_v45, %s887_s22 }
0x15bf   :  { %v652_v46 = vpop.permute.xlu0 %651 }
0x15c0   :  { %v654_v48 = vmul.f32 %v652_v46, %v634_v37 }
0x15c2   :  { %v660_v49 = vmul.f32 %v658_v47, %v654_v48 }
0x15c4   :  { %662 = vrot.lane.b32.xlu0 %v660_v49, %s891_s0 }
0x1636   :  { %v663_v50 = vpop.permute.xlu0 %662 }
0x1637   :  { %v666_v51 = vsel %vm665_vm3, %v663_v50, 0.0 }
0x1638   :  { %667 = vadd.xlane.f32.xlu1 %v666_v51 }
0x16c5   :  { %v668_v52 = vpop.xlane.xlu1 %667 }
0x16c6   :  { %v669_v53 = vadd.f32 %v668_v52, %v658_v47 }
0x16c8   :  { %v705_v54 = vmul.f32 -1.442695, %v669_v53 }
0x16ca   :  { %834 = vpow2.f32 %v705_v54 }
0x16d4   :  { %v835_v55 = vpop.eup %834 }
0x16d5   :  { %v673_v56 = vadd.f32 1.0, %v835_v55 }
0x16d7   :  { %836 = vrcp.f32 %v673_v56 }
0x16e1   :  { %v837_v17 = vpop.eup %836 }
0x16e2   :  { %677 = vst.msk [vmem:[#allocation5 - $0x7] sm:$0x80] %vm676_vm4, %v837_v17 }
0x16e3   :  { %871 = shalt.err (!%p868_p12)
}
0x16e4   :  { %s872_s10 = scalar_lea.hbm %s1050_s3, 16 }
0x16e5   :  { %p873_p13 = scmp.ne.s32.totalorder %s1050_s3, %s872_s10  ;;  %p876_p0 = scmp.lt.u32.totalorder %s872_s10, %s1050_s3 }
0x16e7   :  { %p878_p1 = pnand %p876_p0, %p873_p13 }
0x16e9   :  { %881 = shalt.err (!%p878_p1)
}
0x16ea   :  { %687 = dma.vmem_to_hbm [thread:$0]  %s685_s5, 16, %s1050_s3, [#allocation4]  }
0x16eb   :  { %884 = dma.done.wait [#allocation4], 16  }
0x16ec   :  { %885 = vsyncadd [#allocation4], 4294967280 }
0x16ed   :  { %691 = vsyncpa [#allocation3], 1 }
0x16ee   :  { %692 = vsyncpa [#allocation4], 1 }

</bundles_post_ra>
